<compile_context>
chip_gen: v6e
topology: v6e:2x2x1
jax: 0.10.0
libtpu: 0.0.40
codegen_flags: <defaults>
</compile_context>

<pallas_src>
import jax
import jax.numpy as jnp
from jax import lax
from jax.experimental import pallas as pl
from jax.experimental.pallas import tpu as pltpu


def _stem_kernel(w_ref, p_ref, shift_ref, o_ref):
    # (C_out, K) @ (K, M_tile) on the MXU, f32 accumulation.
    acc = jnp.dot(w_ref[...], p_ref[...], preferred_element_type=jnp.float32)
    # folded conv-bias + BN shift, broadcast (C_out, 1) over lanes (f32 epilogue)
    y = acc + shift_ref[...]
    # ABN activation: leaky_relu, negative slope 0.01 (pytorch_toolbelt default)
    o_ref[...] = jnp.where(y >= 0, y, jnp.float32(0.01) * y).astype(o_ref.dtype)


def _round_up(x, m):
    return ((x + m - 1) // m) * m


def efficientnet_stem(x, w, b, gamma, beta, running_mean, running_var,
                      eps=1e-5, block_m=16384, compute_dtype=jnp.bfloat16):
    """x: (N, C_in, H, W) f32; w: (C_out, C_in, 3, 3); b/gamma/beta/mean/var: (C_out,)."""
    N, C_in, H, W = x.shape
    C_out = w.shape[0]
    Ho = (H + 2 * 1 - 3) // 2 + 1
    Wo = (W + 2 * 1 - 3) // 2 + 1
    M = Ho * Wo                      # per-batch-element output pixels
    K = C_in * 9

    # --- im2col into (N, K, M) -- contiguous reshape, no transposes -------------
    xp = jnp.pad(x, ((0, 0), (0, 0), (1, 1), (1, 1)))
    cols = []
    for kh in range(3):
        for kw in range(3):
            cols.append(xp[:, :, kh:kh + 2 * Ho:2, kw:kw + 2 * Wo:2])  # (N, C_in, Ho, Wo)
    patches = jnp.stack(cols, axis=2)            # (N, C_in, 9, Ho, Wo)
    patches = patches.reshape(N, K, M)           # rows (c_in, kh, kw), cols (oh, ow)

    # --- fold conv bias + eval-mode BN into weights / per-channel shift ---------
    scale = gamma / jnp.sqrt(running_var + eps)                       # (C_out,)
    w_folded = w.reshape(C_out, K) * scale[:, None]                   # (C_out, K)
    shift = ((b - running_mean) * scale + beta).reshape(C_out, 1)     # (C_out, 1), f32

    # --- pad K to a clean sublane-packed multiple (zero rows/cols, no effect) ---
    K_pad = _round_up(K, 16)
    if K_pad != K:
        patches = jnp.pad(patches, ((0, 0), (0, K_pad - K), (0, 0)))
        w_folded = jnp.pad(w_folded, ((0, 0), (0, K_pad - K)))

    # --- tile M (lane axis); pad to a multiple of the tile ----------------------
    bm = _round_up(min(block_m, _round_up(M, 128)), 128)
    M_pad = _round_up(M, bm)
    if M_pad != M:
        patches = jnp.pad(patches, ((0, 0), (0, 0), (0, M_pad - M)))

    patches_c = patches.astype(compute_dtype)
    w_c = w_folded.astype(compute_dtype)
    out_dtype = compute_dtype                       # bf16 output halves HBM write

    grid = (N, M_pad // bm)
    out_flat = pl.pallas_call(
        _stem_kernel,
        out_shape=jax.ShapeDtypeStruct((N, C_out, M_pad), out_dtype),
        grid_spec=pltpu.PrefetchScalarGridSpec(
            num_scalar_prefetch=0,
            grid=grid,
            in_specs=[
                pl.BlockSpec((C_out, K_pad), lambda n, i: (0, 0)),      # folded weights (resident)
                pl.BlockSpec((None, K_pad, bm), lambda n, i: (n, 0, i)),  # patches tile (streamed)
                pl.BlockSpec((C_out, 1), lambda n, i: (0, 0)),          # per-channel shift
            ],
            out_specs=pl.BlockSpec((None, C_out, bm), lambda n, i: (n, 0, i)),
        ),
        compiler_params=pltpu.CompilerParams(
            dimension_semantics=("parallel", "parallel"),   # N and M-tiles shard across TCs
            vmem_limit_bytes=32 * 1024 * 1024,
        ),
    )(w_c, patches_c, shift)

    # (N, C_out, M) -> (N, C_out, Ho, Wo): slice off padded columns, free reshape.
    out = out_flat[:, :, :M].reshape(N, C_out, Ho, Wo)
    return out.astype(x.dtype)


def reference(x, w, b, gamma, beta, rm, rv, eps=1e-5):
    y = lax.conv_general_dilated(
        x, w, window_strides=(2, 2), padding=((1, 1), (1, 1)),
        dimension_numbers=("NCHW", "OIHW", "NCHW"))
    y = y + b.reshape(1, -1, 1, 1)
    y = (y - rm.reshape(1, -1, 1, 1)) / jnp.sqrt(rv.reshape(1, -1, 1, 1) + eps)
    y = y * gamma.reshape(1, -1, 1, 1) + beta.reshape(1, -1, 1, 1)
    return jnp.where(y >= 0, y, 0.01 * y)


if __name__ == "__main__":
    # small shapes consistent with the module: NCHW input, 3x3 s2 conv
    N, C_in, H, W = 2, 4, 16, 16
    C_out = 32

    key = jax.random.PRNGKey(0)
    kx, kw, kb, kg, kbeta, km, kv = jax.random.split(key, 7)

    x = jax.random.normal(kx, (N, C_in, H, W), dtype=jnp.float32)
    w = jax.random.normal(kw, (C_out, C_in, 3, 3), dtype=jnp.float32) * 0.1
    b = jax.random.normal(kb, (C_out,), dtype=jnp.float32) * 0.1
    gamma = 1.0 + 0.1 * jax.random.normal(kg, (C_out,), dtype=jnp.float32)
    beta = 0.1 * jax.random.normal(kbeta, (C_out,), dtype=jnp.float32)
    running_mean = 0.1 * jax.random.normal(km, (C_out,), dtype=jnp.float32)
    running_var = 1.0 + 0.1 * jax.nn.softplus(jax.random.normal(kv, (C_out,), dtype=jnp.float32))

    ref = reference(x, w, b, gamma, beta, running_mean, running_var)

    # 1) f32 GEMM path: algorithmic correctness at tight tolerance.
    out_f32 = efficientnet_stem(x, w, b, gamma, beta, running_mean, running_var,
                                compute_dtype=jnp.float32)
    out_f32 = jax.block_until_ready(out_f32)
    assert out_f32.shape == (N, C_out, H // 2, W // 2), out_f32.shape
    assert jnp.allclose(out_f32, ref, atol=1e-4, rtol=1e-4), \
        float(jnp.max(jnp.abs(out_f32 - ref)))

    # 2) bf16 GEMM path (production config, bf16 output): looser tolerance.
    out_bf16 = efficientnet_stem(x, w, b, gamma, beta, running_mean, running_var,
                                 compute_dtype=jnp.bfloat16)
    out_bf16 = jax.block_until_ready(out_bf16)
    assert out_bf16.shape == (N, C_out, H // 2, W // 2), out_bf16.shape
    assert jnp.allclose(out_bf16, ref, atol=3e-2, rtol=3e-2), \
        float(jnp.max(jnp.abs(out_bf16 - ref)))

    print("KERNEL_OK")
</pallas_src>

<mosaic_0001>
module attributes {stable_mosaic.version = 11 : i64} {
  func.func @_stem_kernel(%arg0: i32, %arg1: i32, %arg2: memref<32x48xf32, #tpu.memory_space<vmem>>, %arg3: memref<1x48x128xf32, #tpu.memory_space<vmem>>, %arg4: memref<32x1xf32, #tpu.memory_space<vmem>>, %arg5: memref<1x32x128xf32, #tpu.memory_space<vmem>>) attributes {dimension_semantics = [#tpu.dimension_semantics<parallel>, #tpu.dimension_semantics<parallel>], iteration_bounds = array<i64: 2, 1>, scalar_prefetch = 0 : i64, scratch_operands = 0 : i64, tpu.core_type = #tpu.core_type<tc>, window_params = [{pipeline_mode = #tpu.pipeline_mode<synchronous>, transform_indices = @transform_0, window_bounds = array<i64: 32, 48>}, {transform_indices = @transform_1, window_bounds = array<i64: 1, 48, 128>}, {pipeline_mode = #tpu.pipeline_mode<synchronous>, transform_indices = @transform_2, window_bounds = array<i64: 32, 1>}, {transform_indices = @transform_3, window_bounds = array<i64: 1, 32, 128>}]} {
    %c0 = arith.constant 0 : index
    %c0_0 = arith.constant 0 : index
    %0 = vector.load %arg2[%c0, %c0_0] : memref<32x48xf32, #tpu.memory_space<vmem>>, vector<32x48xf32>
    %c0_1 = arith.constant 0 : index
    %c0_2 = arith.constant 0 : index
    %c0_3 = arith.constant 0 : index
    %1 = vector.load %arg3[%c0_1, %c0_2, %c0_3] : memref<1x48x128xf32, #tpu.memory_space<vmem>>, vector<1x48x128xf32>
    %2 = vector.shape_cast %1 : vector<1x48x128xf32> to vector<48x128xf32>
    %cst = arith.constant dense<0.000000e+00> : vector<32x128xf32>
    %3 = tpu.matmul %0, %2, %cst {dimension_numbers = #tpu.dot_dimension_numbers<[1], [0], [0], [1], [0, 0, 1, 1], [], []>} : vector<32x48xf32>, vector<48x128xf32>, vector<32x128xf32> -> vector<32x128xf32>
    %c0_4 = arith.constant 0 : index
    %c0_5 = arith.constant 0 : index
    %4 = vector.load %arg4[%c0_4, %c0_5] : memref<32x1xf32, #tpu.memory_space<vmem>>, vector<32x1xf32>
    %5 = vector.broadcast %4 : vector<32x1xf32> to vector<32x128xf32>
    %6 = arith.addf %3, %5 : vector<32x128xf32>
    %cst_6 = arith.constant 0.000000e+00 : f32
    %7 = vector.broadcast %cst_6 : f32 to vector<32x128xf32>
    %8 = arith.cmpf oge, %6, %7 : vector<32x128xf32>
    %cst_7 = arith.constant 0.00999999977 : f32
    %9 = vector.broadcast %cst_7 : f32 to vector<32x128xf32>
    %10 = arith.mulf %9, %6 : vector<32x128xf32>
    %11 = arith.select %8, %6, %10 : vector<32x128xi1>, vector<32x128xf32>
    %c0_8 = arith.constant 0 : index
    %c0_9 = arith.constant 0 : index
    %c0_10 = arith.constant 0 : index
    %12 = vector.load %arg5[%c0_8, %c0_9, %c0_10] : memref<1x32x128xf32, #tpu.memory_space<vmem>>, vector<1x32x128xf32>
    %13 = vector.shape_cast %12 : vector<1x32x128xf32> to vector<32x128xf32>
    %14 = vector.shape_cast %11 : vector<32x128xf32> to vector<1x32x128xf32>
    tpu.vector_store %arg5[%c0_8, %c0_9, %c0_10], %14 {strides = array<i32>} : memref<1x32x128xf32, #tpu.memory_space<vmem>>, vector<1x32x128xf32>,
    return
  }
  func.func @transform_0(%arg0: i32, %arg1: i32) -> (i32, i32) {
    %c0_i32 = arith.constant 0 : i32
    %c0_i32_0 = arith.constant 0 : i32
    %c0_i32_1 = arith.constant 0 : i32
    return %c0_i32, %c0_i32_0 : i32, i32
  }
  func.func @transform_1(%arg0: i32, %arg1: i32) -> (i32, i32, i32) {
    %c0_i32 = arith.constant 0 : i32
    %c0_i32_0 = arith.constant 0 : i32
    return %arg0, %c0_i32, %arg1 : i32, i32, i32
  }
  func.func @transform_2(%arg0: i32, %arg1: i32) -> (i32, i32) {
    %c0_i32 = arith.constant 0 : i32
    %c0_i32_0 = arith.constant 0 : i32
    %c0_i32_1 = arith.constant 0 : i32
    return %c0_i32, %c0_i32_0 : i32, i32
  }
  func.func @transform_3(%arg0: i32, %arg1: i32) -> (i32, i32, i32) {
    %c0_i32 = arith.constant 0 : i32
    %c0_i32_0 = arith.constant 0 : i32
    return %arg0, %c0_i32, %arg1 : i32, i32, i32
  }
}

</mosaic_0001>

<bundles_post_ra>
// kernel: tpu_custom_call.1
= control target key start
LH: loop header
LB: loop body
LE: loop exit
PB: predicated region body
PF: predicated region fallthrough
CT: control target
= control target key end

     0   :  { %8 = vsyncpa [#allocation3], 0  ;;  %s891_s0 = inlined_call_operand.vmem [shape: f32[32,48], index: 0, kind: input, shape index: {}]   ;;  %s892_s1 = inlined_call_operand.hbm [shape: f32[2,48,128], index: 1, kind: input, shape index: {}]   ;;  %s893_s2 = inlined_call_operand.vmem [shape: f32[32,1], index: 2, kind: input, shape index: {}]   ;;  %s894_s3 = inlined_call_operand.hbm [shape: f32[2,32,128], index: 3, kind: output, shape index: {}]  }
   0x1   :  { %10 = vsyncpa [#allocation3 + $0x1], 0 }
   0x2   :  { %11 = vsyncpa [#allocation4], 0 }
   0x3   :  { %13 = vsyncpa [#allocation4 + $0x1], 0  ;;  %s720_s12 = smov 0   ;;  %s722_s13 = smov 0  }
   0x4   :  { %s724_s14 = smov 0   ;;  %s726_s15 = smov 0  }
   0x5   :  { %s728_s16 = smov 0   ;;  %s730_s17 = smov 0  }
   0x6 LB: > { %s454_s18 = sadd.s32 4294967295, %s691_s17   ;;  %s455_s19 = sadd.s32 4294967294, %s691_s17   ;;  %s691_s17 = sphi %s730_s17, %s19_s17   ;;  %s687_s16 = sphi %s728_s16, %s905_s16   ;;  %s683_s15 = sphi %s726_s15, %s904_s15   ;;  %s679_s14 = sphi %s724_s14, %s903_s14   ;;  %s675_s13 = sphi %s722_s13, %s902_s13   ;;  %s671_s12 = sphi %s720_s12, %s901_s12  }
   0x7   : > { %s31_s20 = sadd.s32 1, %s687_s16  ;;  %s61_s21 = sadd.s32 1, %s679_s14 }
   0x8   : > { %p33_p0 = scmp.ge.s32.totalorder %s31_s20, 2  ;;  %p68_p1 = scmp.ne.s32.totalorder %s679_s14, %s675_s13 }
   0x9   : > { %p69_p2 = scmp.eq.s32.totalorder %s691_s17, 0  ;;  %p74_p3 = scmp.ne.s32.totalorder %s675_s13, %s671_s12 }
   0xa   : > { %s907_s20 = smov (%p33_p0, %s31_s20), 0  ;;  %p75_p5 = scmp.eq.s32.totalorder %s454_s18, 0 }
   0xb   : > { %p761_p4 = por %p69_p2, %p68_p1  ;;  %s56_s23 = ssub.s32 %s687_s16, %s907_s20 }
   0xc   : > { %p121_p6 = scmp.eq.s32.totalorder %s454_s18, 1  ;;  %p59_p7 = scmp.eq.s32.totalorder %s56_s23, 0 }
   0xd   : > { %p767_p8 = por %p75_p5, %p74_p3  ;;  %p127_p10 = scmp.eq.s32.totalorder %s455_s19, 1 }
   0xe   : > { %p771_p9 = por %p121_p6, %p68_p1  ;;  %p526_p13 = scmp.lt.s32.totalorder %s691_s17, 2 }
   0xf   : > { %s776_s26 = scalar_select %p59_p7, %s679_s14, %s61_s21  }
  0x10   : > { %p778_p11 = por %p127_p10, %p74_p3  ;;  %s153_s28 = sand.u32 1, %s679_s14  }
  0x11   : > { %s511_s29 = smul.u32 48, %s153_s28  ;;  %p788_p0 = pnand %p526_p13, %p761_p4 }
  0x12   : > { %s512_s30 = smul.u32 768, %s687_s16  ;;  %p459_p1 = scmp.ge.s32.totalorder %s691_s17, 1 }
  0x13   : > { %s157_s8 = scalar_lea.vmem [#allocation2], %s511_s29  ;;  %s154_s10 = scalar_lea.sflag [#allocation3], %s153_s28 }
  0x14   : > { %s164_s7 = scalar_lea.hbm %s892_s1, %s512_s30  ;;  %s165_s9 = sshll.u32 %s157_s8, 4  ;;  %s166_s9 = int_to_ptr.vmem [resolvable:$true] %s165_s9 }
  0x15   : > { %p585_p2 = pneg %p788_p0  ;;  %s596_s11 = scalar_lea.vmem %s166_s9, 768 }
  0x16   : > { %p597_p3 = scmp.ne.s32.totalorder %s166_s9, %s596_s11  ;;  %s693_s18 = smov [#allocation2]  }
  0x17   : > { %s601_s19 = sshll.u32 %s693_s18, 4  ;;  %s602_s19 = int_to_ptr.vmem [resolvable:$false] %s601_s19 }
  0x18   : > { %p599_p5 = pnand %p597_p3, %p585_p2  ;;  %s603_s21 = scalar_lea.vmem %s602_s19, 1536 }
  0x19   : > { %p604_p4 = scmp.lt.s32.totalorder %s166_s9, %s602_s19  ;;  %p605_p7 = scmp.lt.s32.totalorder %s603_s21, %s596_s11 }
  0x1a   : > { %p600_p6 = pneg %p599_p5 }
  0x1b   : > { %p606_p10 = por %p605_p7, %p604_p4 }
  0x1d   : > { %p607_p13 = pnand %p606_p10, %p600_p6 }
  0x1f   : > { %610 = shalt.err (!%p607_p13)
}
  0x20   : > { %s694_s22 = smov 128   ;;  %s695_s23 = smov 8  }
  0x21   : > { %521 = dma.hbm_to_vmem [thread:$0]  (!%p788_p0), %s164_s7, 768, %s166_s9, %s154_s10, %s694_s22, %s694_s22, %s695_s23  }
  0x22   : > { %p173_p12 = scmp.lt.s32.totalorder %s691_s17, 3 }
  0x24   : > { %p174_p2 = pnand %p459_p1, %p173_p12 }
  0x25   : > { %s804_s28 = sand.u32 (!%p174_p2), 1, %s675_s13  }
  0x26   : > { %177 = sbr.rel (%p174_p2) target bundleno = 275 (0x113), region = 32  ;;  %s180_s30 = scalar_lea.sflag (!%p174_p2), [#allocation3], %s804_s28 }
  0x27   : > { %s513_s29 = smul.u32 (!%p174_p2), 48, %s804_s28 }
  0x29   : > { %s183_s5 = scalar_lea.vmem (!%p174_p2), [#allocation2], %s513_s29 }
  0x2b   : > { %662 = dma.done.wait (%p767_p8), %s180_s30, 768  }
  0x2c   : > { %664 = vsyncadd (%p767_p8), %s180_s30, 4294966528  ;;  %v696_v0 = vmov 0   ;;  %v215_v1 = vld [vmem:[%s183_s5 + $0x28] sm:$0xff]  ;;  %v214_v2 = vld [vmem:[%s183_s5 + $0x20] sm:$0xff]  ;;  %vm240_vm0 = vcmask 392192   ;;  %s460_s24 = sshll.u32 %s804_s28, 5 }
  0x2d   : > { %582 = vset.pattern.permute.xlu1 %v696_v0  ;;  %581 = vset.pattern.permute.xlu0 %v696_v0  ;;  %v213_v3 = vld [vmem:[%s183_s5 + $0x18] sm:$0xff]  ;;  %v212_v4 = vld [vmem:[%s183_s5 + $0x10] sm:$0xff]  ;;  %v211_v5 = vld [vmem:[%s183_s5 + $0x8] sm:$0xff]  ;;  %s205_s4 = scalar_lea.vmem [#allocation5], %s460_s24  ;;  %s470_s7 = sshll.u32 %s683_s15, 9 }
  0x2e   : > { %481 = vmatprep.subr.mxu0 %v215_v1  ;;  %499 = vmatprep.subr.mxu1 %v215_v1  ;;  %v210_v6 = vld [vmem:[%s183_s5] sm:$0xff]  ;;  %v207_v9 = vld [vmem:[%s891_s0 + $0x8] sm:$0xff]  ;;  %v209_v10 = vld [vmem:[%s891_s0 + $0x18] sm:$0xff]  ;;  %s369_s6 = sshll.u32 %s205_s4, 4  ;;  %s843_s9 = scalar_lea.hbm %s894_s3, %s470_s7  ;;  %s838_s6 = int_to_ptr.vmem [resolvable:$true] %s369_s6 }
  0x2f   : > { %482 = vmatpush3.msra.mxu0 %v215_v1  ;;  %505 = vmatpush3.msra.mxu1 %v215_v1  ;;  %v206_v7 = vld [vmem:[%s891_s0] sm:$0xff]  ;;  %v208_v8 = vld [vmem:[%s891_s0 + $0x10] sm:$0xff]  ;;  %v219_v13 = vld [vmem:[%s893_s2 + $0x18] sm:$0xff]  ;;  %s355_s10 = scalar_lea.sflag [#allocation4], %s804_s28  ;;  %s611_s11 = scalar_lea.vmem %s838_s6, 512 }
  0x30   : > { %483 = vmatprep.subr.mxu0 %v214_v2  ;;  %500 = vmatprep.subr.mxu1 %v214_v2  ;;  %v218_v11 = vld [vmem:[%s893_s2 + $0x10] sm:$0xff]  ;;  %v216_v12 = vld [vmem:[%s893_s2] sm:$0xff]  ;;  %v217_v14 = vld [vmem:[%s893_s2 + $0x8] sm:$0xff]  ;;  %p612_p8 = scmp.ne.s32.totalorder %s838_s6, %s611_s11  ;;  %s697_s18 = smov [#allocation5]  }
  0x31   : > { %484 = vmatpush3.msra.mxu0 %v214_v2  ;;  %506 = vmatpush3.msra.mxu1 %v214_v2  ;;  %s615_s19 = sshll.u32 %s697_s18, 4  ;;  %s616_s19 = int_to_ptr.vmem [resolvable:$false] %s615_s19 }
  0x32   : > { %485 = vmatprep.subr.mxu0 %v213_v3  ;;  %501 = vmatprep.subr.mxu1 %v213_v3  ;;  %p613_p12 = pnand %p612_p8, %p771_p9  ;;  %s617_s21 = scalar_lea.vmem %s616_s19, 1024 }
  0x33   : > { %486 = vmatpush3.msra.mxu0 %v213_v3  ;;  %507 = vmatpush3.msra.mxu1 %v213_v3  ;;  %p618_p1 = scmp.lt.s32.totalorder %s838_s6, %s616_s19  ;;  %p619_p3 = scmp.lt.s32.totalorder %s617_s21, %s611_s11 }
  0x34   : > { %487 = vmatprep.subr.mxu0 %v212_v4  ;;  %502 = vmatprep.subr.mxu1 %v212_v4  ;;  %p614_p0 = pneg %p613_p12 }
  0x35   : > { %488 = vmatpush3.msra.mxu0 %v212_v4  ;;  %508 = vmatpush3.msra.mxu1 %v212_v4  ;;  %p620_p5 = por %p619_p3, %p618_p1 }
  0x36   : > { %489 = vmatprep.subr.mxu0 %v211_v5  ;;  %503 = vmatprep.subr.mxu1 %v211_v5 }
  0x37   : > { %490 = vmatpush3.msra.mxu0 %v211_v5  ;;  %509 = vmatpush3.msra.mxu1 %v211_v5  ;;  %p621_p6 = pnand %p620_p5, %p614_p0 }
  0x38   : > { %491 = vmatprep.subr.mxu0 %v210_v6  ;;  %504 = vmatprep.subr.mxu1 %v210_v6 }
  0x39   : > { %492 = vmatpush3.msra.mxu0 %v210_v6  ;;  %510 = vmatpush3.msra.mxu1 %v210_v6 }
  0x3a   : > { %493 = vmatprep.mubr.msk.f32.mxu0 %vm240_vm0, %v206_v7  ;;  %496 = vmatprep.mubr.msk.f32.mxu1 %vm240_vm0, %v208_v8 }
  0x3b   : > { %494 = vmatmul.mubr.msk.f32.vlgmr.msra.gmra.mxu0 %vm240_vm0, %v207_v9  ;;  %497 = vmatmul.mubr.msk.f32.vlgmr.msra.gmra.mxu1 %vm240_vm0, %v209_v10 }
  0x3c   : > { %232 = vperm.xlu1 %582, %v218_v11   ;;  %222 = vperm.xlu0 %581, %v216_v12  }
  0x40   : > { %237 = vperm.xlu1 %582, %v219_v13   ;;  %227 = vperm.xlu0 %581, %v217_v14  }
  0xb7   : > { %v233_v15 = vpop.permute.xlu1 %232  ;;  %v223_v16 = vpop.permute.xlu0 %222 }
  0xbb   : > { %v238_v17 = vpop.permute.xlu1 %237  ;;  %v228_v18 = vpop.permute.xlu0 %227 }
  0xfb   : > { %v495_v19 = vpop.f32.mrf.mxu0  ;;  %v498_v20 = vpop.f32.mrf.mxu1 }
  0xfc   : > { %v325_v21 = vadd.f32 %v495_v19, %v228_v18  ;;  %v335_v22 = vadd.f32 %v498_v20, %v238_v17 }
  0xfd   : > { %v319_v23 = vpop.f32.mrf.mxu0  ;;  %v329_v24 = vpop.f32.mrf.mxu1 }
  0xfe   : > { %vm339_vm1 = vcmp.ge.f32.partialorder %v325_v21, 0.0  ;;  %v343_v25 = vmul.f32 0.01, %v325_v21  ;;  %vm341_vm2 = vcmp.ge.f32.partialorder %v335_v22, 0.0  ;;  %v345_v26 = vmul.f32 0.01, %v335_v22 }
  0xff   : > { %v320_v27 = vadd.f32 %v319_v23, %v223_v16  ;;  %v330_v28 = vadd.f32 %v329_v24, %v233_v15 }
 0x100   : > { %v347_v29 = vsel %vm339_vm1, %v325_v21, %v343_v25  ;;  %v349_v30 = vsel %vm341_vm2, %v335_v22, %v345_v26 }
 0x101   : > { %351 = vst [vmem:[%s205_s4 + $0x8] sm:$0xff] %v347_v29  ;;  %353 = vst [vmem:[%s205_s4 + $0x18] sm:$0xff] %v349_v30  ;;  %vm338_vm3 = vcmp.ge.f32.partialorder %v320_v27, 0.0  ;;  %v342_v31 = vmul.f32 0.01, %v320_v27  ;;  %vm340_vm4 = vcmp.ge.f32.partialorder %v330_v28, 0.0 }
 0x102   : > { %v344_v32 = vmul.f32 0.01, %v330_v28 }
 0x103   : > { %v346_v33 = vsel %vm338_vm3, %v320_v27, %v342_v31 }
 0x104   : > { %v348_v34 = vsel %vm340_vm4, %v330_v28, %v344_v32  ;;  %350 = vst [vmem:[%s205_s4] sm:$0xff] %v346_v33 }
 0x105   : > { %352 = vst [vmem:[%s205_s4 + $0x10] sm:$0xff] %v348_v34 }
 0x106   : > { %624 = shalt.err (!%p621_p6)
}
 0x107   : > { %s625_s22 = scalar_lea.hbm %s843_s9, 512  ;;  %s629_s30 = scalar_lea.hbm %s894_s3, 1024 }
 0x108   : > { %p626_p4 = scmp.ne.s32.totalorder %s843_s9, %s625_s22  ;;  %p630_p13 = scmp.lt.s32.totalorder %s843_s9, %s894_s3 }
 0x109   : > { %p631_p2 = scmp.lt.s32.totalorder %s629_s30, %s625_s22 }
 0x10a   : > { %p627_p7 = pnand %p626_p4, %p771_p9 }
 0x10b   : > { %p632_p8 = por %p631_p2, %p630_p13 }
 0x10c   : > { %p628_p10 = pneg %p627_p7 }
 0x10e   : > { %p633_p12 = pnand %p632_p8, %p628_p10 }
 0x110   : > { %636 = shalt.err (!%p633_p12)
}
 0x111   : > { %s698_s4 = smov 128   ;;  %s699_s7 = smov 8  }
 0x112   : > { %516 = dma.vmem_to_hbm [thread:$0]  (%p771_p9), %s838_s6, 512, %s843_s9, %s355_s10, %s698_s4, %s698_s4, %s699_s7  }
 0x113 PF: > { %s384_s15 = sand.u32 1, %s671_s12   ;;  %p900_p0 = scmp.ge.s32.totalorder %s691_s17, 2 }
 0x114   : > { %s385_s8 = scalar_lea.sflag [#allocation4], %s384_s15 }
 0x115   : > { %p523_p1 = pnand %p900_p0, %p778_p11 }
 0x117   : > { %p524_p3 = pneg %p523_p1 }
 0x119   : > { %666 = dma.done.wait (%p524_p3), %s385_s8, 512  }
 0x11a   : > { %668 = vsyncadd (%p524_p3), %s385_s8, 4294966784  ;;  %s19_s17 = sadd.s32 1, %s691_s17   ;;  %s901_s12 = smov %s675_s13 }
 0x11b   : > { %p16_p5 = scmp.ge.s32.totalorder %s19_s17, 4   ;;  %s902_s13 = smov %s679_s14 }
 0x11c   : > { %s903_s14 = smov %s776_s26  ;;  %s904_s15 = smov %s687_s16 }
 0x11d   : > { %s905_s16 = smov %s907_s20  ;;  %18 = sbr.rel (!%p16_p5) target bundleno = 6 (0x6), region = 77 }
 0x122   :  { %390 = vsyncpa [#allocation3], 1 }
 0x123   :  { %392 = vsyncpa [#allocation3 + $0x1], 1 }
 0x124   :  { %393 = vsyncpa [#allocation4], 1 }
 0x125   :  { %395 = vsyncpa [#allocation4 + $0x1], 1 }

</bundles_post_ra>
